<compile_context>
chip_gen: v6e
topology: v6e:2x2x1
jax: 0.10.0
libtpu: 0.0.40
codegen_flags: <defaults>
</compile_context>

<pallas_src>
import jax
import jax.numpy as jnp
from jax import lax
from jax.experimental import pallas as pl
from jax.experimental.pallas import tpu as pltpu


_SUB_ROWS = 128  # rows per inner sub-tile (one MXU-friendly M chunk)


def _round_up(x, m):
    return (x + m - 1) // m * m


def qmix_kernel(x_ref, w1_ref, b1_ref, w2_ref, b2_ref, w3_ref, b3_ref, q_ref):
    """3-layer MLP (dense -> relu -> dense -> relu -> dense) on one batch tile."""
    # Weights/bias loads hoisted once per tile; they stay resident.
    w1 = w1_ref[...]
    w2 = w2_ref[...]
    w3 = w3_ref[...]

    tb = x_ref.shape[0]
    sub = _SUB_ROWS if (tb > _SUB_ROWS and tb % _SUB_ROWS == 0) else tb
    n_sub = tb // sub

    # Hoist bias broadcasts out of the loop: JAX does not CSE broadcast_in_dim,
    # so putting these inside `compute` would re-emit them per unrolled copy.
    b1 = jnp.broadcast_to(b1_ref[...], (sub, w1.shape[1]))
    b2 = jnp.broadcast_to(b2_ref[...], (sub, w2.shape[1]))
    b3 = jnp.broadcast_to(b3_ref[...], (sub, w3.shape[1]))

    def compute(r):
        x = x_ref[pl.ds(r, sub), :]                                   # (sub, n_in)
        h1 = jnp.dot(x, w1, preferred_element_type=jnp.float32) + b1
        h1 = jnp.maximum(h1, 0.0)                                     # ReLU in f32 (VPU)
        h2 = jnp.dot(h1.astype(w2.dtype), w2,
                     preferred_element_type=jnp.float32) + b2
        h2 = jnp.maximum(h2, 0.0)
        q = jnp.dot(h2.astype(w3.dtype), w3,
                    preferred_element_type=jnp.float32) + b3
        q_ref[pl.ds(r, sub), :] = q.astype(q_ref.dtype)               # lane-dense store

    if n_sub == 1:
        compute(0)
    else:
        # Fully unrolled so sub-tile i+1's loads/matmuls overlap sub-tile i's
        # MXU-result pops and bias+ReLU VPU work.
        def body(i, carry):
            compute(pl.multiple_of(i * sub, sub))
            return carry

        lax.fori_loop(0, n_sub, body, 0, unroll=True)


def qmix_forward(x, params, *, tb=1024,
                 operand_dtype=jnp.bfloat16, out_dtype=jnp.bfloat16):
    """x: (..., n_in) float32.  params: w1,b1,w2,b2,w3,b3 with W stored as (in, out).

    Returns float32 (..., n_actions), matching QMixForwardModel.forward.
    Default is bf16 matmul operands / bf16 output with f32 accumulation; pass
    operand_dtype=out_dtype=jnp.float32 for bit-closer parity with the f32 module.
    """
    lead = x.shape[:-1]
    n_in = x.shape[-1]
    x2 = x.reshape(-1, n_in)                     # fold agents / timesteps into batch
    B = x2.shape[0]

    n_hidden = params["w1"].shape[1]
    n_actions = params["w3"].shape[1]

    # --- lane-dense output: pad n_actions up to a full 128-lane tile ----------
    na_pad = _round_up(n_actions, 128)
    w3 = params["w3"]
    b3 = params["b3"]
    if na_pad != n_actions:
        w3 = jnp.pad(w3, ((0, 0), (0, na_pad - n_actions)))
        b3 = jnp.pad(b3, ((0, 0), (0, na_pad - n_actions)))

    # --- matmul operands, cast once here (not per grid step) ------------------
    xk = x2.astype(operand_dtype)
    w1 = params["w1"].astype(operand_dtype)
    w2 = params["w2"].astype(operand_dtype)
    w3 = w3.astype(operand_dtype)
    b1 = params["b1"].astype(jnp.float32)        # bias add + ReLU stay in f32
    b2 = params["b2"].astype(jnp.float32)
    b3 = b3.astype(jnp.float32)

    # --- batch tiling ----------------------------------------------------------
    # Big tiles amortize the ~0.35 us/step grid overhead (kernel is mem-bound),
    # but keep >= 2 grid steps when possible so v7x's 2 TensorCores both work.
    if B > 16:
        half = _round_up((B + 1) // 2, 16)       # 16: bf16 sublane packing
    else:
        half = _round_up(max(B, 1), 16)
    tb_eff = max(16, min(tb, half))
    B_pad = _round_up(B, tb_eff)
    if B_pad != B:
        xk = jnp.pad(xk, ((0, B_pad - B), (0, 0)))

    grid = (B_pad // tb_eff,)

    x_spec = pl.BlockSpec((tb_eff, n_in), lambda i: (i, 0))
    w1_spec = pl.BlockSpec((n_in, n_hidden), lambda i: (0, 0))
    b1_spec = pl.BlockSpec((1, n_hidden), lambda i: (0, 0))
    w2_spec = pl.BlockSpec((n_hidden, n_hidden), lambda i: (0, 0))
    b2_spec = pl.BlockSpec((1, n_hidden), lambda i: (0, 0))
    w3_spec = pl.BlockSpec((n_hidden, na_pad), lambda i: (0, 0))
    b3_spec = pl.BlockSpec((1, na_pad), lambda i: (0, 0))
    q_spec = pl.BlockSpec((tb_eff, na_pad), lambda i: (i, 0))

    op_bytes = jnp.dtype(operand_dtype).itemsize
    out_bytes = jnp.dtype(out_dtype).itemsize
    weight_bytes = ((n_in * n_hidden + n_hidden * n_hidden + n_hidden * na_pad) * op_bytes
                    + (2 * n_hidden + na_pad) * 4)
    flops = 2 * B_pad * (n_in * n_hidden + n_hidden * n_hidden + n_hidden * na_pad)
    bytes_accessed = B_pad * n_in * op_bytes + B_pad * na_pad * out_bytes + weight_bytes
    cost = pl.CostEstimate(flops=flops, transcendentals=0,
                           bytes_accessed=bytes_accessed)

    # Double-buffered x & q tiles + resident weights, with generous headroom.
    # Cap below v7x's 64 MiB physical VMEM; irrelevant at tb <= 2048.
    est_vmem = 2 * tb_eff * (n_in * op_bytes + na_pad * out_bytes) + 2 * weight_bytes
    vmem_limit = int(min(max(4 * est_vmem, 16 << 20), 48 << 20))

    q_pad = pl.pallas_call(
        qmix_kernel,
        out_shape=jax.ShapeDtypeStruct((B_pad, na_pad), out_dtype),
        grid_spec=pltpu.PrefetchScalarGridSpec(
            num_scalar_prefetch=0,
            grid=grid,
            in_specs=[x_spec, w1_spec, b1_spec, w2_spec, b2_spec, w3_spec, b3_spec],
            out_specs=q_spec,
        ),
        compiler_params=pltpu.CompilerParams(
            dimension_semantics=("parallel",),
            vmem_limit_bytes=vmem_limit,
        ),
        cost_estimate=cost,
    )(xk, w1, b1, w2, b2, w3, b3)

    q = q_pad[:B, :n_actions].astype(jnp.float32)
    return q.reshape(*lead, n_actions)


def make_params(key, input_shape, n_actions, n_hidden):
    """Deterministic synthetic parameters (shapes match the nn.Linear layers)."""
    k1, k2, k3, k4, k5, k6 = jax.random.split(key, 6)
    # stored as (in, out) == PyTorch weight.T
    w1 = jax.random.normal(k1, (input_shape, n_hidden), jnp.float32) * 0.1
    b1 = jax.random.normal(k2, (1, n_hidden), jnp.float32) * 0.1
    w2 = jax.random.normal(k3, (n_hidden, n_hidden), jnp.float32) * 0.1
    b2 = jax.random.normal(k4, (1, n_hidden), jnp.float32) * 0.1
    w3 = jax.random.normal(k5, (n_hidden, n_actions), jnp.float32) * 0.1
    b3 = jax.random.normal(k6, (1, n_actions), jnp.float32) * 0.1
    return dict(w1=w1, b1=b1, w2=w2, b2=b2, w3=w3, b3=b3)


def qmix_forward_ref(x, p, matmul_dtype=jnp.float32):
    """Pure-JAX reference matching the PyTorch forward (optionally bf16 matmuls)."""
    def dense(a, w, b):
        return jnp.dot(a.astype(matmul_dtype), w.astype(matmul_dtype),
                       preferred_element_type=jnp.float32) + b
    h1 = jax.nn.relu(dense(x, p["w1"], p["b1"]))
    h2 = jax.nn.relu(dense(h1, p["w2"], p["b2"]))
    return dense(h2, p["w3"], p["b3"])


if __name__ == "__main__":
    # small shapes consistent with the module: batch of flat observations
    B, input_shape, n_actions, n_hidden = 64, 48, 16, 32

    key = jax.random.PRNGKey(0)
    kx, kp = jax.random.split(key)
    x = jax.random.normal(kx, (B, input_shape), jnp.float32)
    params = make_params(kp, input_shape, n_actions, n_hidden)

    q = jax.block_until_ready(qmix_forward(x, params))
    assert q.shape == (B, n_actions)

    q_ref_bf16 = qmix_forward_ref(x, params, matmul_dtype=jnp.bfloat16)
    q_ref_f32 = qmix_forward_ref(x, params, matmul_dtype=jnp.float32)

    # tight check vs a reference using the same bf16-operand / f32-accum recipe
    # (the kernel additionally rounds the output to bf16 -> ~1 bf16 ulp extra)
    assert jnp.allclose(q, q_ref_bf16, atol=5e-3, rtol=5e-3), "mismatch vs bf16 reference"
    # loose check vs the pure-f32 PyTorch-equivalent reference
    assert jnp.allclose(q, q_ref_f32, atol=1e-1, rtol=1e-1), "mismatch vs f32 reference"

    # leading-dim folding path (e.g. (n_agents, batch, n_in)) gives identical results
    q3 = jax.block_until_ready(qmix_forward(x.reshape(4, 16, input_shape), params))
    assert q3.shape == (4, 16, n_actions)
    assert jnp.allclose(q3.reshape(B, n_actions), q), "leading-dim fold mismatch"

    # optional full-f32 operand/output path for closer parity with the f32 module
    q_f32 = jax.block_until_ready(
        qmix_forward(x, params, operand_dtype=jnp.float32, out_dtype=jnp.float32))
    assert jnp.allclose(q_f32, q_ref_f32, atol=2e-2, rtol=2e-2), "f32 path mismatch"

    print("KERNEL_OK")
</pallas_src>

<mosaic_0001>
module attributes {stable_mosaic.version = 11 : i64} {
  func.func @qmix_kernel(%arg0: i32, %arg1: memref<32x48xbf16, #tpu.memory_space<vmem>>, %arg2: memref<48x32xbf16, #tpu.memory_space<vmem>>, %arg3: memref<1x32xf32, #tpu.memory_space<vmem>>, %arg4: memref<32x32xbf16, #tpu.memory_space<vmem>>, %arg5: memref<1x32xf32, #tpu.memory_space<vmem>>, %arg6: memref<32x128xbf16, #tpu.memory_space<vmem>>, %arg7: memref<1x128xf32, #tpu.memory_space<vmem>>, %arg8: memref<32x128xbf16, #tpu.memory_space<vmem>>) attributes {dimension_semantics = [#tpu.dimension_semantics<parallel>], iteration_bounds = array<i64: 2>, scalar_prefetch = 0 : i64, scratch_operands = 0 : i64, tpu.core_type = #tpu.core_type<tc>, window_params = [{transform_indices = @transform_0, window_bounds = array<i64: 32, 48>}, {pipeline_mode = #tpu.pipeline_mode<synchronous>, transform_indices = @transform_1, window_bounds = array<i64: 48, 32>}, {pipeline_mode = #tpu.pipeline_mode<synchronous>, transform_indices = @transform_2, window_bounds = array<i64: 1, 32>}, {pipeline_mode = #tpu.pipeline_mode<synchronous>, transform_indices = @transform_3, window_bounds = array<i64: 32, 32>}, {pipeline_mode = #tpu.pipeline_mode<synchronous>, transform_indices = @transform_4, window_bounds = array<i64: 1, 32>}, {pipeline_mode = #tpu.pipeline_mode<synchronous>, transform_indices = @transform_5, window_bounds = array<i64: 32, 128>}, {pipeline_mode = #tpu.pipeline_mode<synchronous>, transform_indices = @transform_6, window_bounds = array<i64: 1, 128>}, {transform_indices = @transform_7, window_bounds = array<i64: 32, 128>}]} {
    %c0 = arith.constant 0 : index
    %c0_0 = arith.constant 0 : index
    %0 = vector.load %arg2[%c0, %c0_0] : memref<48x32xbf16, #tpu.memory_space<vmem>>, vector<48x32xbf16>
    %c0_1 = arith.constant 0 : index
    %c0_2 = arith.constant 0 : index
    %1 = vector.load %arg4[%c0_1, %c0_2] : memref<32x32xbf16, #tpu.memory_space<vmem>>, vector<32x32xbf16>
    %c0_3 = arith.constant 0 : index
    %c0_4 = arith.constant 0 : index
    %2 = vector.load %arg6[%c0_3, %c0_4] : memref<32x128xbf16, #tpu.memory_space<vmem>>, vector<32x128xbf16>
    %c0_5 = arith.constant 0 : index
    %c0_6 = arith.constant 0 : index
    %3 = vector.load %arg3[%c0_5, %c0_6] : memref<1x32xf32, #tpu.memory_space<vmem>>, vector<1x32xf32>
    %4 = vector.shape_cast %3 : vector<1x32xf32> to vector<1x32xf32>
    %5 = vector.broadcast %4 : vector<1x32xf32> to vector<32x32xf32>
    %c0_7 = arith.constant 0 : index
    %c0_8 = arith.constant 0 : index
    %6 = vector.load %arg5[%c0_7, %c0_8] : memref<1x32xf32, #tpu.memory_space<vmem>>, vector<1x32xf32>
    %7 = vector.shape_cast %6 : vector<1x32xf32> to vector<1x32xf32>
    %8 = vector.broadcast %7 : vector<1x32xf32> to vector<32x32xf32>
    %c0_9 = arith.constant 0 : index
    %c0_10 = arith.constant 0 : index
    %9 = vector.load %arg7[%c0_9, %c0_10] : memref<1x128xf32, #tpu.memory_space<vmem>>, vector<1x128xf32>
    %10 = vector.shape_cast %9 : vector<1x128xf32> to vector<1x128xf32>
    %11 = vector.broadcast %10 : vector<1x128xf32> to vector<32x128xf32>
    %c0_11 = arith.constant 0 : index
    %c0_12 = arith.constant 0 : index
    %12 = vector.load %arg1[%c0_11, %c0_12] : memref<32x48xbf16, #tpu.memory_space<vmem>>, vector<32x48xbf16>
    %cst = arith.constant dense<0.000000e+00> : vector<32x32xf32>
    %13 = tpu.matmul %12, %0, %cst {dimension_numbers = #tpu.dot_dimension_numbers<[1], [0], [0], [1], [0, 0, 1, 1], [], []>} : vector<32x48xbf16>, vector<48x32xbf16>, vector<32x32xf32> -> vector<32x32xf32>
    %14 = arith.addf %13, %5 : vector<32x32xf32>
    %cst_13 = arith.constant 0.000000e+00 : f32
    %15 = vector.broadcast %cst_13 : f32 to vector<32x32xf32>
    %16 = arith.maximumf %14, %15 : vector<32x32xf32>
    %17 = arith.truncf %16 : vector<32x32xf32> to vector<32x32xbf16>
    %cst_14 = arith.constant dense<0.000000e+00> : vector<32x32xf32>
    %18 = tpu.matmul %17, %1, %cst_14 {dimension_numbers = #tpu.dot_dimension_numbers<[1], [0], [0], [1], [0, 0, 1, 1], [], []>} : vector<32x32xbf16>, vector<32x32xbf16>, vector<32x32xf32> -> vector<32x32xf32>
    %19 = arith.addf %18, %8 : vector<32x32xf32>
    %cst_15 = arith.constant 0.000000e+00 : f32
    %20 = vector.broadcast %cst_15 : f32 to vector<32x32xf32>
    %21 = arith.maximumf %19, %20 : vector<32x32xf32>
    %22 = arith.truncf %21 : vector<32x32xf32> to vector<32x32xbf16>
    %cst_16 = arith.constant dense<0.000000e+00> : vector<32x128xf32>
    %23 = tpu.matmul %22, %2, %cst_16 {dimension_numbers = #tpu.dot_dimension_numbers<[1], [0], [0], [1], [0, 0, 1, 1], [], []>} : vector<32x32xbf16>, vector<32x128xbf16>, vector<32x128xf32> -> vector<32x128xf32>
    %24 = arith.addf %23, %11 : vector<32x128xf32>
    %25 = arith.truncf %24 : vector<32x128xf32> to vector<32x128xbf16>
    %c0_17 = arith.constant 0 : index
    %c0_18 = arith.constant 0 : index
    %26 = vector.load %arg8[%c0_17, %c0_18] : memref<32x128xbf16, #tpu.memory_space<vmem>>, vector<32x128xbf16>
    tpu.vector_store %arg8[%c0_17, %c0_18], %25 {strides = array<i32>} : memref<32x128xbf16, #tpu.memory_space<vmem>>, vector<32x128xbf16>,
    return
  }
  func.func @transform_0(%arg0: i32) -> (i32, i32) {
    %c0_i32 = arith.constant 0 : i32
    %c0_i32_0 = arith.constant 0 : i32
    return %arg0, %c0_i32 : i32, i32
  }
  func.func @transform_1(%arg0: i32) -> (i32, i32) {
    %c0_i32 = arith.constant 0 : i32
    %c0_i32_0 = arith.constant 0 : i32
    %c0_i32_1 = arith.constant 0 : i32
    return %c0_i32, %c0_i32_0 : i32, i32
  }
  func.func @transform_2(%arg0: i32) -> (i32, i32) {
    %c0_i32 = arith.constant 0 : i32
    %c0_i32_0 = arith.constant 0 : i32
    %c0_i32_1 = arith.constant 0 : i32
    return %c0_i32, %c0_i32_0 : i32, i32
  }
  func.func @transform_3(%arg0: i32) -> (i32, i32) {
    %c0_i32 = arith.constant 0 : i32
    %c0_i32_0 = arith.constant 0 : i32
    %c0_i32_1 = arith.constant 0 : i32
    return %c0_i32, %c0_i32_0 : i32, i32
  }
  func.func @transform_4(%arg0: i32) -> (i32, i32) {
    %c0_i32 = arith.constant 0 : i32
    %c0_i32_0 = arith.constant 0 : i32
    %c0_i32_1 = arith.constant 0 : i32
    return %c0_i32, %c0_i32_0 : i32, i32
  }
  func.func @transform_5(%arg0: i32) -> (i32, i32) {
    %c0_i32 = arith.constant 0 : i32
    %c0_i32_0 = arith.constant 0 : i32
    %c0_i32_1 = arith.constant 0 : i32
    return %c0_i32, %c0_i32_0 : i32, i32
  }
  func.func @transform_6(%arg0: i32) -> (i32, i32) {
    %c0_i32 = arith.constant 0 : i32
    %c0_i32_0 = arith.constant 0 : i32
    %c0_i32_1 = arith.constant 0 : i32
    return %c0_i32, %c0_i32_0 : i32, i32
  }
  func.func @transform_7(%arg0: i32) -> (i32, i32) {
    %c0_i32 = arith.constant 0 : i32
    %c0_i32_0 = arith.constant 0 : i32
    return %arg0, %c0_i32 : i32, i32
  }
}

</mosaic_0001>

<bundles_post_ra>
// kernel: tpu_custom_call.1
= control target key start
LH: loop header
LB: loop body
LE: loop exit
PB: predicated region body
PF: predicated region fallthrough
CT: control target
= control target key end

     0   :  { %12 = vsyncpa [#allocation3], 0  ;;  %s1026_s0 = inlined_call_operand.vmem [shape: bf16[64,48], index: 0, kind: input, shape index: {}]   ;;  %s1027_s1 = inlined_call_operand.vmem [shape: bf16[48,32], index: 1, kind: input, shape index: {}]   ;;  %s1028_s2 = inlined_call_operand.vmem [shape: f32[1,32], index: 2, kind: input, shape index: {}]   ;;  %s1029_s3 = inlined_call_operand.vmem [shape: bf16[32,32], index: 3, kind: input, shape index: {}]   ;;  %s1030_s4 = inlined_call_operand.vmem [shape: f32[1,32], index: 4, kind: input, shape index: {}]   ;;  %s1031_s5 = inlined_call_operand.vmem [shape: bf16[32,128], index: 5, kind: input, shape index: {}]   ;;  %s1032_s6 = inlined_call_operand.vmem [shape: f32[1,128], index: 6, kind: input, shape index: {}]   ;;  %s1033_s7 = inlined_call_operand.hbm [shape: bf16[64,128], index: 7, kind: output, shape index: {}]  }
   0x1   :  { %14 = vsyncpa [#allocation3 + $0x1], 0  ;;  %s891_s24 = smov 0   ;;  %s893_s25 = smov 0  }
   0x2   :  { %s895_s26 = smov 0   ;;  %s897_s27 = smov 0  }
   0x3 LB: > { %s912_s28 = sadd.s32 4294967295, %s846_s27   ;;  %s647_s29 = sadd.s32 4294967294, %s846_s27   ;;  %s846_s27 = sphi %s897_s27, %s1039_s27   ;;  %s842_s26 = sphi %s895_s26, %s1038_s26   ;;  %s838_s25 = sphi %s893_s25, %s1037_s25   ;;  %s834_s24 = sphi %s891_s24, %s1036_s24  }
   0x4   : > { %s916_s30 = sadd.s32 1, %s846_s27   ;;  %s179_s8 = sadd.s32 1, %s842_s26 }
   0x5   : > { %s176_s9 = ssub.s32 %s846_s27, %s916_s30  ;;  %p189_p0 = scmp.ne.s32.totalorder %s842_s26, %s838_s25 }
   0x6   : > { %p177_p1 = scmp.eq.s32.totalorder %s176_s9, 0  ;;  %p190_p2 = scmp.eq.s32.totalorder %s912_s28, 1 }
   0x7   : > { %p195_p3 = scmp.ne.s32.totalorder %s838_s25, %s834_s24  ;;  %p196_p4 = scmp.eq.s32.totalorder %s647_s29, 1 }
   0x8   : > { %s927_s10 = scalar_select %p177_p1, %s842_s26, %s179_s8  }
   0x9   : > { %p929_p5 = por %p190_p2, %p189_p0  ;;  %p933_p6 = por %p196_p4, %p195_p3 }
   0xa   : > { %p650_p7 = scmp.ge.s32.totalorder %s846_s27, 1  ;;  %p241_p8 = scmp.lt.s32.totalorder %s846_s27, 3 }
   0xc   : > { %p242_p9 = pnand %p650_p7, %p241_p8 }
   0xd   : > { %s652_s15 = sshll.u32 (!%p242_p9), %s912_s28, 2  ;;  %s270_s22 = sand.u32 (!%p242_p9), 1, %s838_s25  }
   0xe   : > { %245 = sbr.rel (%p242_p9) target bundleno = 661 (0x295), region = 48  ;;  %p274_p10 = scmp.lt.s32.totalorder (!%p242_p9), %s652_s15, 7 }
   0xf   : > { %s685_s14 = sshll.u32 (!%p242_p9), %s912_s28, 8  ;;  %s986_s18 = scalar_lea.sflag (!%p242_p9), [#allocation3], %s270_s22 }
  0x10   : > { %s984_s17 = scalar_lea.hbm (!%p242_p9), %s1033_s7, %s685_s14  ;;  %s848_s19 = smov (!%p242_p9), [#allocation2]  }
  0x13   : > { %v777_v0 = vld [vmem:[%s1027_s1 + $0x10] sm:$0xff]   ;;  %v778_v1 = vld [vmem:[%s1027_s1 + $0x8] sm:$0xff]   ;;  %v779_v2 = vld [vmem:[%s1027_s1] sm:$0xff]   ;;  %s1041_s15 = smov (!%p274_p10, %s652_s15), 7  ;;  %vm348_vm0 = vcmask 392192   ;;  %vm422_vm1 = vcmask 261120  }
  0x14   : > { %710 = vmatprep.subr.bf16.mxu0 %v777_v0  ;;  %s653_s20 = sshll.u32 %s1041_s15, 2  ;;  %v782_v5 = vld [vmem:[%s1029_s3 + $0x8] sm:$0xff]   ;;  %v783_v6 = vld [vmem:[%s1029_s3] sm:$0xff]  }
  0x15   : > { %711 = vmatpush3.bf16.msra.mxu0 %v777_v0  ;;  %s277_s23 = scalar_lea.vmem %s1026_s0, %s653_s20  ;;  %720 = vmatprep.subr.bf16.mxu1 %v782_v5  ;;  %v654_v9 = vld [vmem:[%s1028_s2] ss:$0 sm:$0xff]  ;;  %v784_v22 = vld [vmem:[%s1031_s5 + $0x8] sm:$0xff]   ;;  %s790_s20 = sshll.u32 %s848_s19, 4  ;;  %s791_s20 = int_to_ptr.vmem [resolvable:$false] %s790_s20 }
  0x16   : > { %712 = vmatprep.subr.bf16.mxu0 %v778_v1  ;;  %v780_v3 = vld [vmem:[%s277_s23] sm:$0xff]   ;;  %v781_v4 = vld [vmem:[%s277_s23 + $0x8] sm:$0xff]   ;;  %721 = vmatpush3.bf16.msra.mxu1 %v782_v5  ;;  %s651_s23 = sshll.u32 %s270_s22, 4  ;;  %s792_s21 = scalar_lea.vmem %s791_s20, 512 }
  0x17   : > { %716 = vmatprep.mubr.msk.bf16.mxu0 %vm348_vm0, %v780_v3  ;;  %722 = vmatprep.subr.bf16.mxu1 %v783_v6  ;;  %v785_v23 = vld [vmem:[%s1031_s5] sm:$0xff]   ;;  %s272_s9 = scalar_lea.vmem [#allocation2], %s651_s23 }
  0x18   : > { %v655_v26 = vld [vmem:[%s1030_s4] ss:$0 sm:$0xff]  ;;  %s585_s13 = sshll.u32 %s272_s9, 4  ;;  %s979_s13 = int_to_ptr.vmem [resolvable:$true] %s585_s13 }
  0x19   : > { %713 = vmatpush3.bf16.msra.mxu0 %v778_v1  ;;  %v656_v40 = vld [vmem:[%s1032_s6] ss:$0 sm:$0xff]  ;;  %s786_s28 = scalar_lea.vmem %s979_s13, 256  ;;  %p793_p0 = scmp.lt.s32.totalorder %s979_s13, %s791_s20 }
  0x1a   : > { %714 = vmatprep.subr.bf16.mxu0 %v779_v2  ;;  %723 = vmatpush3.bf16.msra.mxu1 %v783_v6  ;;  %p787_p11 = scmp.ne.s32.totalorder %s979_s13, %s786_s28  ;;  %p794_p1 = scmp.lt.s32.totalorder %s792_s21, %s786_s28 }
  0x1b   : > { %728 = vmatprep.subr.bf16.mxu1 %v784_v22 }
  0x1c   : > { %p788_p12 = pnand %p787_p11, %p929_p5  ;;  %p795_p2 = por %p794_p1, %p793_p0 }
  0x1d   : > { %715 = vmatpush3.bf16.msra.mxu0 %v779_v2 }
  0x1e   : > { %p789_p13 = pneg %p788_p12 }
  0x20   : > { %717 = vmatmul.mubr.msk.bf16.vlgmr.msra.gmra.mxu0 %vm348_vm0, %v781_v4  ;;  %p796_p3 = pnand %p795_p2, %p789_p13 }
  0xe0   : > { %v718_v7 = vpop.f32.mrf.mxu0 }
  0xe1   : > { %v398_v13 = vadd.f32 %v718_v7, %v654_v9 }
  0xe2   : > { %v389_v8 = vpop.f32.mrf.mxu0 }
  0xe3   : > { %v390_v11 = vadd.f32 %v654_v9, %v389_v8  ;;  %v406_v19 = vmax.f32 %v398_v13, 0.0 }
  0xe4   : > { %v719_v10 = vpop.f32.mrf.mxu0 }
  0xe5   : > { %v401_v12 = vadd.f32 %v719_v10, %v654_v9  ;;  %v404_v17 = vmax.f32 %v390_v11, 0.0 }
  0xe6   : > { %v392_v14 = vpop.f32.mrf.mxu0 }
  0xe7   : > { %v393_v15 = vadd.f32 %v654_v9, %v392_v14  ;;  %v407_v16 = vmax.f32 %v401_v12, 0.0 }
  0xe9   : > { %v405_v18 = vmax.f32 %v393_v15, 0.0  ;;  %v409_v21 = vpack.c.bf16 %v407_v16, %v406_v19 }
  0xeb   : > { %v408_v20 = vpack.c.bf16 %v405_v18, %v404_v17 }
  0xed   : > { %724 = vmatprep.mubr.msk.bf16.mxu1 %vm422_vm1, %v408_v20 }
  0xee   : > { %725 = vmatmul.mubr.msk.bf16.vlgmr.msra.gmra.mxu1 %vm422_vm1, %v409_v21 }
  0xef   : > { %729 = vmatpush3.bf16.msra.mxu1 %v784_v22 }
  0xf0   : > { %730 = vmatprep.subr.bf16.mxu1 %v785_v23 }
  0xf3   : > { %731 = vmatpush3.bf16.msra.mxu1 %v785_v23 }
 0x1ae   : > { %v726_v24 = vpop.f32.mrf.mxu1 }
 0x1af   : > { %v472_v30 = vadd.f32 %v726_v24, %v655_v26 }
 0x1b0   : > { %v463_v25 = vpop.f32.mrf.mxu1 }
 0x1b1   : > { %v464_v28 = vadd.f32 %v655_v26, %v463_v25  ;;  %v480_v36 = vmax.f32 %v472_v30, 0.0 }
 0x1b2   : > { %v727_v27 = vpop.f32.mrf.mxu1 }
 0x1b3   : > { %v475_v29 = vadd.f32 %v727_v27, %v655_v26  ;;  %v478_v34 = vmax.f32 %v464_v28, 0.0 }
 0x1b4   : > { %v466_v31 = vpop.f32.mrf.mxu1 }
 0x1b5   : > { %v467_v32 = vadd.f32 %v655_v26, %v466_v31  ;;  %v481_v33 = vmax.f32 %v475_v29, 0.0 }
 0x1b7   : > { %v479_v35 = vmax.f32 %v467_v32, 0.0  ;;  %v483_v38 = vpack.c.bf16 %v481_v33, %v480_v36 }
 0x1b9   : > { %v482_v37 = vpack.c.bf16 %v479_v35, %v478_v34 }
 0x1bb   : > { %732 = vmatprep.mubr.msk.bf16.mxu1 %vm422_vm1, %v482_v37 }
 0x1bc   : > { %733 = vmatmul.mubr.msk.bf16.vlgmr.msra.gmra.mxu1 %vm422_vm1, %v483_v38 }
 0x27c   : > { %v734_v39 = vpop.f32.mrf.mxu1 }
 0x27d   : > { %v545_v43 = vadd.f32 %v734_v39, %v656_v40 }
 0x27e   : > { %v536_v41 = vpop.f32.mrf.mxu1 }
 0x27f   : > { %v537_v46 = vadd.f32 %v656_v40, %v536_v41 }
 0x280   : > { %v735_v42 = vpop.f32.mrf.mxu1 }
 0x281   : > { %v548_v44 = vadd.f32 %v735_v42, %v656_v40 }
 0x282   : > { %v539_v45 = vpop.f32.mrf.mxu1 }
 0x283   : > { %v694_v47 = vpack.c.bf16 %v548_v44, %v545_v43  ;;  %v540_v48 = vadd.f32 %v656_v40, %v539_v45 }
 0x285   : > { %696 = vst [vmem:[%s272_s9 + $0x8] sm:$0xff] %v694_v47   ;;  %v689_v49 = vpack.c.bf16 %v540_v48, %v537_v46 }
 0x287   : > { %690 = vst [vmem:[%s272_s9] sm:$0xff] %v689_v49  }
 0x288   : > { %799 = shalt.err (!%p796_p3)
}
 0x289   : > { %s800_s22 = scalar_lea.hbm %s984_s17, 256  ;;  %s804_s8 = scalar_lea.hbm %s1033_s7, 512 }
 0x28a   : > { %p801_p4 = scmp.ne.s32.totalorder %s984_s17, %s800_s22  ;;  %p805_p9 = scmp.lt.s32.totalorder %s984_s17, %s1033_s7 }
 0x28b   : > { %p806_p10 = scmp.lt.s32.totalorder %s804_s8, %s800_s22 }
 0x28c   : > { %p802_p7 = pnand %p801_p4, %p929_p5 }
 0x28d   : > { %p807_p11 = por %p806_p10, %p805_p9 }
 0x28e   : > { %p803_p8 = pneg %p802_p7 }
 0x290   : > { %p808_p12 = pnand %p807_p11, %p803_p8 }
 0x292   : > { %811 = shalt.err (!%p808_p12)
}
 0x293   : > { %s849_s15 = smov 64   ;;  %s850_s16 = smov 4  }
 0x294   : > { %736 = dma.vmem_to_hbm [thread:$0]  (%p929_p5), %s979_s13, 256, %s984_s17, %s986_s18, %s849_s15, %s849_s15, %s850_s16  }
 0x295 PF: > { %p742_p13 = scmp.ge.s32.totalorder %s846_s27, 2  ;;  %s600_s28 = sand.u32 1, %s834_s24  }
 0x296   : > { %s601_s19 = scalar_lea.sflag [#allocation3], %s600_s28 }
 0x297   : > { %p739_p0 = pnand %p742_p13, %p933_p6 }
 0x299   : > { %p740_p1 = pneg %p739_p0 }
 0x29b   : > { %829 = dma.done.wait (%p740_p1), %s601_s19, 256  }
 0x29c   : > { %831 = vsyncadd (%p740_p1), %s601_s19, 4294967040  ;;  %p17_p2 = scmp.ge.s32.totalorder %s916_s30, 4   ;;  %s1036_s24 = smov %s838_s25 }
 0x29d   : > { %s1037_s25 = smov %s842_s26  ;;  %s1038_s26 = smov %s927_s10 }
 0x29e   : > { %s1039_s27 = smov %s916_s30  ;;  %19 = sbr.rel (!%p17_p2) target bundleno = 3 (0x3), region = 83 }
 0x2a3   :  { %606 = vsyncpa [#allocation3], 1 }
 0x2a4   :  { %608 = vsyncpa [#allocation3 + $0x1], 1 }

</bundles_post_ra>
